<compile_context>
chip_gen: v7x
topology: tpu7x:2x2x1
jax: 0.10.0
libtpu: 0.0.40
codegen_flags: <defaults>
</compile_context>

<pallas_src>
import jax
import jax.numpy as jnp
from jax.experimental import pallas as pl
from jax.experimental.pallas import tpu as pltpu


def _make_downblock_kernel(H, W, Cin, Cout, neg_slope=0.2):
    Ho, Wo = H // 2, W // 2
    N = Ho * Wo

    def store_tap(dst_ref, row0, rows, src, delta):
        """dst[r, n] = src[r, n + delta], zero-filled outside [0, N)."""
        if delta == 0:
            dst_ref[row0:row0 + rows, :] = src.astype(dst_ref.dtype)
        elif delta < 0:
            k = -delta
            dst_ref[row0:row0 + rows, 0:k] = jnp.zeros((rows, k), dst_ref.dtype)
            dst_ref[row0:row0 + rows, k:N] = src[:, 0:N - k].astype(dst_ref.dtype)
        else:
            dst_ref[row0:row0 + rows, 0:N - delta] = src[:, delta:N].astype(dst_ref.dtype)
            dst_ref[row0:row0 + rows, N - delta:N] = jnp.zeros((rows, delta), dst_ref.dtype)

    def kernel(colidx_ref, x_ref, w1_ref, b1_ref, w2_ref, b2_ref, o_ref,
               p1_ref, p2_ref):
        colidx = colidx_ref[...]                       # (1, N) int32: s = n % Wo
        not_last_col = colidx != (Wo - 1)              # kills wrap onto dest col 0
        not_first_col = colidx != 0                    # kills wrap onto dest col Wo-1

        # Space-to-depth phases: X[rp, cp][c, r, s] = x[c, 2r+rp, 2s+cp]
        x_all = x_ref[0]                               # (4*Cin, N) f32
        phases = [x_all[p * Cin:(p + 1) * Cin, :] for p in range(4)]
        # Pre-masked odd-column phases for kw==0 taps (hoisted, used 3x).
        masked_odd = {0: jnp.where(not_last_col, phases[1], 0.0),
                      1: jnp.where(not_last_col, phases[3], 0.0)}

        # ---- stage 1: 3x3 stride-2 conv as one (Cout,9Cin)x(9Cin,N) matmul --
        # tap(kh,kw)[c,r,s] = xpad[c, 2r+kh, 2s+kw]  ==  a flat lane shift of
        # one phase image with zero fill at the (quarter-res) border.
        for kh in range(3):
            rp = 0 if kh == 1 else 1                   # even x rows only for kh==1
            rshift = Wo if kh == 0 else 0
            for kw in range(3):
                if kw == 1:
                    src, cshift = phases[2 * rp + 0], 0
                elif kw == 2:
                    src, cshift = phases[2 * rp + 1], 0
                else:                                  # kw == 0
                    src, cshift = masked_odd[rp], 1
                store_tap(p1_ref, (kh * 3 + kw) * Cin, Cin, src,
                          -(rshift + cshift))

        a1 = jnp.dot(w1_ref[...], p1_ref[...],
                     preferred_element_type=jnp.float32)        # (Cout, N)
        a1 = a1 + b1_ref[...]
        a1 = jnp.where(a1 >= 0, a1, neg_slope * a1)

        # ---- stage 2: 3x3 stride-1 conv; a1 never leaves VMEM ---------------
        a1_kw0 = jnp.where(not_last_col, a1, 0.0)
        a1_kw2 = jnp.where(not_first_col, a1, 0.0)
        for kh in range(3):
            for kw in range(3):
                src = a1_kw0 if kw == 0 else (a1_kw2 if kw == 2 else a1)
                store_tap(p2_ref, (kh * 3 + kw) * Cout, Cout, src,
                          (kh - 1) * Wo + (kw - 1))

        a2 = jnp.dot(w2_ref[...], p2_ref[...],
                     preferred_element_type=jnp.float32)        # (Cout, N)
        a2 = a2 + b2_ref[...]
        a2 = jnp.where(a2 >= 0, a2, neg_slope * a2)

        # Lane-dense NCHW store: result is already (Cout, Ho*Wo), no transpose.
        o_ref[0] = a2.astype(o_ref.dtype)

    return kernel, Ho, Wo


def _fused_downblock_pallas(colidx, x_s2d, w1m, b1m, w2m, b2m, *, H, W):
    """colidx: (1, Ho*Wo) i32; x_s2d: (B, 4*Cin, Ho*Wo) f32 (space-to-depth);
    w*m: (Cout, 9*C) bf16; b*m: (Cout, 1) f32."""
    B = x_s2d.shape[0]
    Cin = x_s2d.shape[1] // 4
    Cout = w1m.shape[0]
    kernel, Ho, Wo = _make_downblock_kernel(H, W, Cin, Cout)
    N = Ho * Wo
    return pl.pallas_call(
        kernel,
        out_shape=jax.ShapeDtypeStruct((B, Cout, N), x_s2d.dtype),
        grid=(B,),
        in_specs=[
            pl.BlockSpec((1, N), lambda b: (0, 0)),
            pl.BlockSpec((1, 4 * Cin, N), lambda b: (b, 0, 0)),
            pl.BlockSpec((Cout, 9 * Cin), lambda b: (0, 0)),
            pl.BlockSpec((Cout, 1), lambda b: (0, 0)),
            pl.BlockSpec((Cout, 9 * Cout), lambda b: (0, 0)),
            pl.BlockSpec((Cout, 1), lambda b: (0, 0)),
        ],
        out_specs=pl.BlockSpec((1, Cout, N), lambda b: (b, 0, 0)),
        scratch_shapes=[
            pltpu.VMEM((9 * Cin, N), jnp.bfloat16),    # stage-1 im2col (bf16)
            pltpu.VMEM((9 * Cout, N), jnp.bfloat16),   # stage-2 im2col (bf16)
        ],
        compiler_params=pltpu.CompilerParams(
            dimension_semantics=("parallel",),
            vmem_limit_bytes=32 * 1024 * 1024,         # v5e default is only 16 MiB
        ),
    )(colidx, x_s2d, w1m, b1m, w2m, b2m)


def _pack_conv_weight(w_oihw):
    """(Cout, Cin, 3, 3) torch layout -> (Cout, 9*Cin) bf16, cols ordered (kh, kw, cin)."""
    cout, cin = w_oihw.shape[0], w_oihw.shape[1]
    return (jnp.transpose(w_oihw, (0, 2, 3, 1))
            .reshape(cout, 9 * cin)
            .astype(jnp.bfloat16))


def init_downblock_params(key, in_ch, out_ch, dtype=jnp.float32):
    """PyTorch-like kaiming-uniform init; weights kept in torch OIHW layout."""
    k1, k2, k3, k4 = jax.random.split(key, 4)

    def conv_init(kw_key, kb_key, cin, cout):
        bound = 1.0 / float((cin * 9) ** 0.5)
        w = jax.random.uniform(kw_key, (cout, cin, 3, 3), dtype, -bound, bound)
        b = jax.random.uniform(kb_key, (cout,), dtype, -bound, bound)
        return w, b

    w1, b1 = conv_init(k1, k2, in_ch, out_ch)
    w2, b2 = conv_init(k3, k4, out_ch, out_ch)
    return {"w1": w1, "b1": b1, "w2": w2, "b2": b2}


@jax.jit
def downblock_forward(params, x_nchw):
    """Matches downblock(in_ch, out_ch).forward(x); x and output in NCHW."""
    B, Cin, H, W = x_nchw.shape
    assert H % 2 == 0 and W % 2 == 0 and H >= 4 and W >= 4, "even spatial dims >= 4 expected"
    Cout = params["b1"].shape[0]
    Ho, Wo = H // 2, W // 2

    w1m = _pack_conv_weight(params["w1"])
    w2m = _pack_conv_weight(params["w2"])
    b1m = params["b1"].reshape(Cout, 1).astype(jnp.float32)
    b2m = params["b2"].reshape(Cout, 1).astype(jnp.float32)

    # One-time space-to-depth layout pass (XLA) over the small input so the
    # kernel's stride-2 taps become plain lane shifts (no lane-strided slices).
    x_s2d = x_nchw.reshape(B, Cin, Ho, 2, Wo, 2)
    x_s2d = jnp.transpose(x_s2d, (0, 3, 5, 1, 2, 4)).reshape(B, 4 * Cin, Ho * Wo)

    # Static per-lane column index (s = n % Wo) used for border masks in-kernel.
    colidx = (jnp.arange(Ho * Wo, dtype=jnp.int32) % Wo).reshape(1, Ho * Wo)

    y = _fused_downblock_pallas(colidx, x_s2d, w1m, b1m, w2m, b2m, H=H, W=W)
    return y.reshape(B, Cout, Ho, Wo)                   # metadata-only reshape


# ----------------------------- reference / test ------------------------------
def _ref_conv_lrelu(x, w, b, stride):
    # Same numerics as the kernel: bf16 operands, f32 accumulation & epilogue.
    y = jax.lax.conv_general_dilated(
        x.astype(jnp.bfloat16), w.astype(jnp.bfloat16),
        window_strides=(stride, stride), padding=((1, 1), (1, 1)),
        dimension_numbers=("NCHW", "OIHW", "NCHW"),
        preferred_element_type=jnp.float32)
    y = y + b.reshape(1, -1, 1, 1)
    return jnp.where(y >= 0, y, 0.2 * y)


def _ref_forward(params, x_nchw):
    y = _ref_conv_lrelu(x_nchw, params["w1"], params["b1"], 2)
    y = _ref_conv_lrelu(y, params["w2"], params["b2"], 1)
    return y


if __name__ == "__main__":
    key = jax.random.PRNGKey(0)
    k_param, k_x = jax.random.split(key)

    B, in_ch, out_ch, H, W = 2, 4, 8, 16, 16
    params = init_downblock_params(k_param, in_ch, out_ch)
    x = jax.random.normal(k_x, (B, in_ch, H, W), jnp.float32)  # NCHW like PyTorch

    out = jax.block_until_ready(downblock_forward(params, x))
    assert out.shape == (B, out_ch, H // 2, W // 2), out.shape

    ref = jax.block_until_ready(_ref_forward(params, x))
    max_err = float(jnp.max(jnp.abs(out - ref)))
    assert jnp.allclose(out, ref, atol=1e-2, rtol=1e-2), (
        f"mismatch vs XLA reference, max abs err = {max_err}")

    print("KERNEL_OK")
</pallas_src>

<mosaic_0001>
module attributes {stable_mosaic.version = 11 : i64} {
  func.func @kernel(%arg0: i32, %arg1: memref<1x64xi32, #tpu.memory_space<vmem>>, %arg2: memref<1x16x64xf32, #tpu.memory_space<vmem>>, %arg3: memref<8x36xbf16, #tpu.memory_space<vmem>>, %arg4: memref<8x1xf32, #tpu.memory_space<vmem>>, %arg5: memref<8x72xbf16, #tpu.memory_space<vmem>>, %arg6: memref<8x1xf32, #tpu.memory_space<vmem>>, %arg7: memref<1x8x64xf32, #tpu.memory_space<vmem>>, %arg8: memref<36x64xbf16, #tpu.memory_space<vmem>>, %arg9: memref<72x64xbf16, #tpu.memory_space<vmem>>) attributes {dimension_semantics = [#tpu.dimension_semantics<parallel>], iteration_bounds = array<i64: 2>, scalar_prefetch = 0 : i64, scratch_operands = 2 : i64, tpu.core_type = #tpu.core_type<tc>, window_params = [{pipeline_mode = #tpu.pipeline_mode<synchronous>, transform_indices = @transform_0, window_bounds = array<i64: 1, 64>}, {transform_indices = @transform_1, window_bounds = array<i64: 1, 16, 64>}, {pipeline_mode = #tpu.pipeline_mode<synchronous>, transform_indices = @transform_2, window_bounds = array<i64: 8, 36>}, {pipeline_mode = #tpu.pipeline_mode<synchronous>, transform_indices = @transform_3, window_bounds = array<i64: 8, 1>}, {pipeline_mode = #tpu.pipeline_mode<synchronous>, transform_indices = @transform_4, window_bounds = array<i64: 8, 72>}, {pipeline_mode = #tpu.pipeline_mode<synchronous>, transform_indices = @transform_5, window_bounds = array<i64: 8, 1>}, {transform_indices = @transform_6, window_bounds = array<i64: 1, 8, 64>}]} {
    %c0 = arith.constant 0 : index
    %c0_0 = arith.constant 0 : index
    %0 = vector.load %arg1[%c0, %c0_0] : memref<1x64xi32, #tpu.memory_space<vmem>>, vector<1x64xi32>
    %c7_i32 = arith.constant 7 : i32
    %1 = vector.broadcast %c7_i32 : i32 to vector<1x64xi32>
    %2 = arith.cmpi ne, %0, %1 : vector<1x64xi32>
    %c0_i32 = arith.constant 0 : i32
    %3 = vector.broadcast %c0_i32 : i32 to vector<1x64xi32>
    %4 = arith.cmpi ne, %0, %3 : vector<1x64xi32>
    %c0_1 = arith.constant 0 : index
    %c0_2 = arith.constant 0 : index
    %c0_3 = arith.constant 0 : index
    %5 = vector.load %arg2[%c0_1, %c0_2, %c0_3] : memref<1x16x64xf32, #tpu.memory_space<vmem>>, vector<1x16x64xf32>
    %6 = vector.shape_cast %5 : vector<1x16x64xf32> to vector<16x64xf32>
    %7 = vector.extract_strided_slice %6 {offsets = [0, 0], sizes = [4, 64], strides = [1, 1]} : vector<16x64xf32> to vector<4x64xf32>
    %8 = vector.extract_strided_slice %6 {offsets = [4, 0], sizes = [4, 64], strides = [1, 1]} : vector<16x64xf32> to vector<4x64xf32>
    %9 = vector.extract_strided_slice %6 {offsets = [8, 0], sizes = [4, 64], strides = [1, 1]} : vector<16x64xf32> to vector<4x64xf32>
    %10 = vector.extract_strided_slice %6 {offsets = [12, 0], sizes = [4, 64], strides = [1, 1]} : vector<16x64xf32> to vector<4x64xf32>
    %cst = arith.constant 0.000000e+00 : f32
    %11 = vector.shape_cast %2 : vector<1x64xi1> to vector<1x64xi1>
    %12 = vector.broadcast %11 : vector<1x64xi1> to vector<4x64xi1>
    %13 = vector.broadcast %cst : f32 to vector<4x64xf32>
    %14 = arith.select %12, %8, %13 : vector<4x64xi1>, vector<4x64xf32>
    %cst_4 = arith.constant 0.000000e+00 : f32
    %15 = vector.shape_cast %2 : vector<1x64xi1> to vector<1x64xi1>
    %16 = vector.broadcast %15 : vector<1x64xi1> to vector<4x64xi1>
    %17 = vector.broadcast %cst_4 : f32 to vector<4x64xf32>
    %18 = arith.select %16, %10, %17 : vector<4x64xi1>, vector<4x64xf32>
    %cst_5 = arith.constant 0.000000e+00 : bf16
    %19 = vector.broadcast %cst_5 : bf16 to vector<4x9xbf16>
    %c0_6 = arith.constant 0 : index
    %c0_7 = arith.constant 0 : index
    %20 = vector.load %arg8[%c0_6, %c0_7] : memref<36x64xbf16, #tpu.memory_space<vmem>>, vector<4x9xbf16>
    tpu.vector_store %arg8[%c0_6, %c0_7], %19 {strides = array<i32>} : memref<36x64xbf16, #tpu.memory_space<vmem>>, vector<4x9xbf16>,
    %21 = vector.extract_strided_slice %18 {offsets = [0, 0], sizes = [4, 55], strides = [1, 1]} : vector<4x64xf32> to vector<4x55xf32>
    %22 = arith.truncf %21 : vector<4x55xf32> to vector<4x55xbf16>
    %c0_8 = arith.constant 0 : index
    %c9 = arith.constant 9 : index
    %23 = vector.load %arg8[%c0_8, %c9] : memref<36x64xbf16, #tpu.memory_space<vmem>>, vector<4x55xbf16>
    tpu.vector_store %arg8[%c0_8, %c9], %22 {strides = array<i32>} : memref<36x64xbf16, #tpu.memory_space<vmem>>, vector<4x55xbf16>,
    %cst_9 = arith.constant 0.000000e+00 : bf16
    %24 = vector.broadcast %cst_9 : bf16 to vector<4x8xbf16>
    %c4 = arith.constant 4 : index
    %c0_10 = arith.constant 0 : index
    %25 = vector.load %arg8[%c4, %c0_10] : memref<36x64xbf16, #tpu.memory_space<vmem>>, vector<4x8xbf16>
    tpu.vector_store %arg8[%c4, %c0_10], %24 {strides = array<i32>} : memref<36x64xbf16, #tpu.memory_space<vmem>>, vector<4x8xbf16>,
    %26 = vector.extract_strided_slice %9 {offsets = [0, 0], sizes = [4, 56], strides = [1, 1]} : vector<4x64xf32> to vector<4x56xf32>
    %27 = arith.truncf %26 : vector<4x56xf32> to vector<4x56xbf16>
    %c4_11 = arith.constant 4 : index
    %c8 = arith.constant 8 : index
    %28 = vector.load %arg8[%c4_11, %c8] : memref<36x64xbf16, #tpu.memory_space<vmem>>, vector<4x56xbf16>
    tpu.vector_store %arg8[%c4_11, %c8], %27 {strides = array<i32>} : memref<36x64xbf16, #tpu.memory_space<vmem>>, vector<4x56xbf16>,
    %cst_12 = arith.constant 0.000000e+00 : bf16
    %29 = vector.broadcast %cst_12 : bf16 to vector<4x8xbf16>
    %c8_13 = arith.constant 8 : index
    %c0_14 = arith.constant 0 : index
    %30 = vector.load %arg8[%c8_13, %c0_14] : memref<36x64xbf16, #tpu.memory_space<vmem>>, vector<4x8xbf16>
    tpu.vector_store %arg8[%c8_13, %c0_14], %29 {strides = array<i32>} : memref<36x64xbf16, #tpu.memory_space<vmem>>, vector<4x8xbf16>,
    %31 = vector.extract_strided_slice %10 {offsets = [0, 0], sizes = [4, 56], strides = [1, 1]} : vector<4x64xf32> to vector<4x56xf32>
    %32 = arith.truncf %31 : vector<4x56xf32> to vector<4x56xbf16>
    %c8_15 = arith.constant 8 : index
    %c8_16 = arith.constant 8 : index
    %33 = vector.load %arg8[%c8_15, %c8_16] : memref<36x64xbf16, #tpu.memory_space<vmem>>, vector<4x56xbf16>
    tpu.vector_store %arg8[%c8_15, %c8_16], %32 {strides = array<i32>} : memref<36x64xbf16, #tpu.memory_space<vmem>>, vector<4x56xbf16>,
    %cst_17 = arith.constant 0.000000e+00 : bf16
    %34 = vector.broadcast %cst_17 : bf16 to vector<4x1xbf16>
    %c12 = arith.constant 12 : index
    %c0_18 = arith.constant 0 : index
    %35 = vector.load %arg8[%c12, %c0_18] : memref<36x64xbf16, #tpu.memory_space<vmem>>, vector<4x1xbf16>
    tpu.vector_store %arg8[%c12, %c0_18], %34 {strides = array<i32>} : memref<36x64xbf16, #tpu.memory_space<vmem>>, vector<4x1xbf16>,
    %36 = vector.extract_strided_slice %14 {offsets = [0, 0], sizes = [4, 63], strides = [1, 1]} : vector<4x64xf32> to vector<4x63xf32>
    %37 = arith.truncf %36 : vector<4x63xf32> to vector<4x63xbf16>
    %c12_19 = arith.constant 12 : index
    %c1 = arith.constant 1 : index
    %38 = vector.load %arg8[%c12_19, %c1] : memref<36x64xbf16, #tpu.memory_space<vmem>>, vector<4x63xbf16>
    tpu.vector_store %arg8[%c12_19, %c1], %37 {strides = array<i32>} : memref<36x64xbf16, #tpu.memory_space<vmem>>, vector<4x63xbf16>,
    %39 = arith.truncf %7 : vector<4x64xf32> to vector<4x64xbf16>
    %c16 = arith.constant 16 : index
    %c0_20 = arith.constant 0 : index
    %40 = vector.load %arg8[%c16, %c0_20] : memref<36x64xbf16, #tpu.memory_space<vmem>>, vector<4x64xbf16>
    tpu.vector_store %arg8[%c16, %c0_20], %39 {strides = array<i32>} : memref<36x64xbf16, #tpu.memory_space<vmem>>, vector<4x64xbf16>,
    %41 = arith.truncf %8 : vector<4x64xf32> to vector<4x64xbf16>
    %c20 = arith.constant 20 : index
    %c0_21 = arith.constant 0 : index
    %42 = vector.load %arg8[%c20, %c0_21] : memref<36x64xbf16, #tpu.memory_space<vmem>>, vector<4x64xbf16>
    tpu.vector_store %arg8[%c20, %c0_21], %41 {strides = array<i32>} : memref<36x64xbf16, #tpu.memory_space<vmem>>, vector<4x64xbf16>,
    %cst_22 = arith.constant 0.000000e+00 : bf16
    %43 = vector.broadcast %cst_22 : bf16 to vector<4x1xbf16>
    %c24 = arith.constant 24 : index
    %c0_23 = arith.constant 0 : index
    %44 = vector.load %arg8[%c24, %c0_23] : memref<36x64xbf16, #tpu.memory_space<vmem>>, vector<4x1xbf16>
    tpu.vector_store %arg8[%c24, %c0_23], %43 {strides = array<i32>} : memref<36x64xbf16, #tpu.memory_space<vmem>>, vector<4x1xbf16>,
    %45 = vector.extract_strided_slice %18 {offsets = [0, 0], sizes = [4, 63], strides = [1, 1]} : vector<4x64xf32> to vector<4x63xf32>
    %46 = arith.truncf %45 : vector<4x63xf32> to vector<4x63xbf16>
    %c24_24 = arith.constant 24 : index
    %c1_25 = arith.constant 1 : index
    %47 = vector.load %arg8[%c24_24, %c1_25] : memref<36x64xbf16, #tpu.memory_space<vmem>>, vector<4x63xbf16>
    tpu.vector_store %arg8[%c24_24, %c1_25], %46 {strides = array<i32>} : memref<36x64xbf16, #tpu.memory_space<vmem>>, vector<4x63xbf16>,
    %48 = arith.truncf %9 : vector<4x64xf32> to vector<4x64xbf16>
    %c28 = arith.constant 28 : index
    %c0_26 = arith.constant 0 : index
    %49 = vector.load %arg8[%c28, %c0_26] : memref<36x64xbf16, #tpu.memory_space<vmem>>, vector<4x64xbf16>
    tpu.vector_store %arg8[%c28, %c0_26], %48 {strides = array<i32>} : memref<36x64xbf16, #tpu.memory_space<vmem>>, vector<4x64xbf16>,
    %50 = arith.truncf %10 : vector<4x64xf32> to vector<4x64xbf16>
    %c32 = arith.constant 32 : index
    %c0_27 = arith.constant 0 : index
    %51 = vector.load %arg8[%c32, %c0_27] : memref<36x64xbf16, #tpu.memory_space<vmem>>, vector<4x64xbf16>
    tpu.vector_store %arg8[%c32, %c0_27], %50 {strides = array<i32>} : memref<36x64xbf16, #tpu.memory_space<vmem>>, vector<4x64xbf16>,
    %c0_28 = arith.constant 0 : index
    %c0_29 = arith.constant 0 : index
    %52 = vector.load %arg3[%c0_28, %c0_29] : memref<8x36xbf16, #tpu.memory_space<vmem>>, vector<8x36xbf16>
    %c0_30 = arith.constant 0 : index
    %c0_31 = arith.constant 0 : index
    %53 = vector.load %arg8[%c0_30, %c0_31] : memref<36x64xbf16, #tpu.memory_space<vmem>>, vector<36x64xbf16>
    %cst_32 = arith.constant dense<0.000000e+00> : vector<8x64xf32>
    %54 = tpu.matmul %52, %53, %cst_32 {dimension_numbers = #tpu.dot_dimension_numbers<[1], [0], [0], [1], [0, 0, 1, 1], [], []>} : vector<8x36xbf16>, vector<36x64xbf16>, vector<8x64xf32> -> vector<8x64xf32>
    %c0_33 = arith.constant 0 : index
    %c0_34 = arith.constant 0 : index
    %55 = vector.load %arg4[%c0_33, %c0_34] : memref<8x1xf32, #tpu.memory_space<vmem>>, vector<8x1xf32>
    %56 = vector.broadcast %55 : vector<8x1xf32> to vector<8x64xf32>
    %57 = arith.addf %54, %56 : vector<8x64xf32>
    %cst_35 = arith.constant 0.000000e+00 : f32
    %58 = vector.broadcast %cst_35 : f32 to vector<8x64xf32>
    %59 = arith.cmpf oge, %57, %58 : vector<8x64xf32>
    %cst_36 = arith.constant 2.000000e-01 : f32
    %60 = vector.broadcast %cst_36 : f32 to vector<8x64xf32>
    %61 = arith.mulf %60, %57 : vector<8x64xf32>
    %62 = arith.select %59, %57, %61 : vector<8x64xi1>, vector<8x64xf32>
    %cst_37 = arith.constant 0.000000e+00 : f32
    %63 = vector.shape_cast %2 : vector<1x64xi1> to vector<1x64xi1>
    %64 = vector.broadcast %63 : vector<1x64xi1> to vector<8x64xi1>
    %65 = vector.broadcast %cst_37 : f32 to vector<8x64xf32>
    %66 = arith.select %64, %62, %65 : vector<8x64xi1>, vector<8x64xf32>
    %cst_38 = arith.constant 0.000000e+00 : f32
    %67 = vector.shape_cast %4 : vector<1x64xi1> to vector<1x64xi1>
    %68 = vector.broadcast %67 : vector<1x64xi1> to vector<8x64xi1>
    %69 = vector.broadcast %cst_38 : f32 to vector<8x64xf32>
    %70 = arith.select %68, %62, %69 : vector<8x64xi1>, vector<8x64xf32>
    %cst_39 = arith.constant 0.000000e+00 : bf16
    %71 = vector.broadcast %cst_39 : bf16 to vector<8x9xbf16>
    %c0_40 = arith.constant 0 : index
    %c0_41 = arith.constant 0 : index
    %72 = vector.load %arg9[%c0_40, %c0_41] : memref<72x64xbf16, #tpu.memory_space<vmem>>, vector<8x9xbf16>
    tpu.vector_store %arg9[%c0_40, %c0_41], %71 {strides = array<i32>} : memref<72x64xbf16, #tpu.memory_space<vmem>>, vector<8x9xbf16>,
    %73 = vector.extract_strided_slice %66 {offsets = [0, 0], sizes = [8, 55], strides = [1, 1]} : vector<8x64xf32> to vector<8x55xf32>
    %74 = arith.truncf %73 : vector<8x55xf32> to vector<8x55xbf16>
    %c0_42 = arith.constant 0 : index
    %c9_43 = arith.constant 9 : index
    %75 = vector.load %arg9[%c0_42, %c9_43] : memref<72x64xbf16, #tpu.memory_space<vmem>>, vector<8x55xbf16>
    tpu.vector_store %arg9[%c0_42, %c9_43], %74 {strides = array<i32>} : memref<72x64xbf16, #tpu.memory_space<vmem>>, vector<8x55xbf16>,
    %cst_44 = arith.constant 0.000000e+00 : bf16
    %76 = vector.broadcast %cst_44 : bf16 to vector<8x8xbf16>
    %c8_45 = arith.constant 8 : index
    %c0_46 = arith.constant 0 : index
    %77 = vector.load %arg9[%c8_45, %c0_46] : memref<72x64xbf16, #tpu.memory_space<vmem>>, vector<8x8xbf16>
    tpu.vector_store %arg9[%c8_45, %c0_46], %76 {strides = array<i32>} : memref<72x64xbf16, #tpu.memory_space<vmem>>, vector<8x8xbf16>,
    %78 = vector.extract_strided_slice %62 {offsets = [0, 0], sizes = [8, 56], strides = [1, 1]} : vector<8x64xf32> to vector<8x56xf32>
    %79 = arith.truncf %78 : vector<8x56xf32> to vector<8x56xbf16>
    %c8_47 = arith.constant 8 : index
    %c8_48 = arith.constant 8 : index
    %80 = vector.load %arg9[%c8_47, %c8_48] : memref<72x64xbf16, #tpu.memory_space<vmem>>, vector<8x56xbf16>
    tpu.vector_store %arg9[%c8_47, %c8_48], %79 {strides = array<i32>} : memref<72x64xbf16, #tpu.memory_space<vmem>>, vector<8x56xbf16>,
    %cst_49 = arith.constant 0.000000e+00 : bf16
    %81 = vector.broadcast %cst_49 : bf16 to vector<8x7xbf16>
    %c16_50 = arith.constant 16 : index
    %c0_51 = arith.constant 0 : index
    %82 = vector.load %arg9[%c16_50, %c0_51] : memref<72x64xbf16, #tpu.memory_space<vmem>>, vector<8x7xbf16>
    tpu.vector_store %arg9[%c16_50, %c0_51], %81 {strides = array<i32>} : memref<72x64xbf16, #tpu.memory_space<vmem>>, vector<8x7xbf16>,
    %83 = vector.extract_strided_slice %70 {offsets = [0, 0], sizes = [8, 57], strides = [1, 1]} : vector<8x64xf32> to vector<8x57xf32>
    %84 = arith.truncf %83 : vector<8x57xf32> to vector<8x57xbf16>
    %c16_52 = arith.constant 16 : index
    %c7 = arith.constant 7 : index
    %85 = vector.load %arg9[%c16_52, %c7] : memref<72x64xbf16, #tpu.memory_space<vmem>>, vector<8x57xbf16>
    tpu.vector_store %arg9[%c16_52, %c7], %84 {strides = array<i32>} : memref<72x64xbf16, #tpu.memory_space<vmem>>, vector<8x57xbf16>,
    %cst_53 = arith.constant 0.000000e+00 : bf16
    %86 = vector.broadcast %cst_53 : bf16 to vector<8x1xbf16>
    %c24_54 = arith.constant 24 : index
    %c0_55 = arith.constant 0 : index
    %87 = vector.load %arg9[%c24_54, %c0_55] : memref<72x64xbf16, #tpu.memory_space<vmem>>, vector<8x1xbf16>
    tpu.vector_store %arg9[%c24_54, %c0_55], %86 {strides = array<i32>} : memref<72x64xbf16, #tpu.memory_space<vmem>>, vector<8x1xbf16>,
    %88 = vector.extract_strided_slice %66 {offsets = [0, 0], sizes = [8, 63], strides = [1, 1]} : vector<8x64xf32> to vector<8x63xf32>
    %89 = arith.truncf %88 : vector<8x63xf32> to vector<8x63xbf16>
    %c24_56 = arith.constant 24 : index
    %c1_57 = arith.constant 1 : index
    %90 = vector.load %arg9[%c24_56, %c1_57] : memref<72x64xbf16, #tpu.memory_space<vmem>>, vector<8x63xbf16>
    tpu.vector_store %arg9[%c24_56, %c1_57], %89 {strides = array<i32>} : memref<72x64xbf16, #tpu.memory_space<vmem>>, vector<8x63xbf16>,
    %91 = arith.truncf %62 : vector<8x64xf32> to vector<8x64xbf16>
    %c32_58 = arith.constant 32 : index
    %c0_59 = arith.constant 0 : index
    %92 = vector.load %arg9[%c32_58, %c0_59] : memref<72x64xbf16, #tpu.memory_space<vmem>>, vector<8x64xbf16>
    tpu.vector_store %arg9[%c32_58, %c0_59], %91 {strides = array<i32>} : memref<72x64xbf16, #tpu.memory_space<vmem>>, vector<8x64xbf16>,
    %93 = vector.extract_strided_slice %70 {offsets = [0, 1], sizes = [8, 63], strides = [1, 1]} : vector<8x64xf32> to vector<8x63xf32>
    %94 = arith.truncf %93 : vector<8x63xf32> to vector<8x63xbf16>
    %c40 = arith.constant 40 : index
    %c0_60 = arith.constant 0 : index
    %95 = vector.load %arg9[%c40, %c0_60] : memref<72x64xbf16, #tpu.memory_space<vmem>>, vector<8x63xbf16>
    tpu.vector_store %arg9[%c40, %c0_60], %94 {strides = array<i32>} : memref<72x64xbf16, #tpu.memory_space<vmem>>, vector<8x63xbf16>,
    %cst_61 = arith.constant 0.000000e+00 : bf16
    %96 = vector.broadcast %cst_61 : bf16 to vector<8x1xbf16>
    %c40_62 = arith.constant 40 : index
    %c63 = arith.constant 63 : index
    %97 = vector.load %arg9[%c40_62, %c63] : memref<72x64xbf16, #tpu.memory_space<vmem>>, vector<8x1xbf16>
    tpu.vector_store %arg9[%c40_62, %c63], %96 {strides = array<i32>} : memref<72x64xbf16, #tpu.memory_space<vmem>>, vector<8x1xbf16>,
    %98 = vector.extract_strided_slice %66 {offsets = [0, 7], sizes = [8, 57], strides = [1, 1]} : vector<8x64xf32> to vector<8x57xf32>
    %99 = arith.truncf %98 : vector<8x57xf32> to vector<8x57xbf16>
    %c48 = arith.constant 48 : index
    %c0_63 = arith.constant 0 : index
    %100 = vector.load %arg9[%c48, %c0_63] : memref<72x64xbf16, #tpu.memory_space<vmem>>, vector<8x57xbf16>
    tpu.vector_store %arg9[%c48, %c0_63], %99 {strides = array<i32>} : memref<72x64xbf16, #tpu.memory_space<vmem>>, vector<8x57xbf16>,
    %cst_64 = arith.constant 0.000000e+00 : bf16
    %101 = vector.broadcast %cst_64 : bf16 to vector<8x7xbf16>
    %c48_65 = arith.constant 48 : index
    %c57 = arith.constant 57 : index
    %102 = vector.load %arg9[%c48_65, %c57] : memref<72x64xbf16, #tpu.memory_space<vmem>>, vector<8x7xbf16>
    tpu.vector_store %arg9[%c48_65, %c57], %101 {strides = array<i32>} : memref<72x64xbf16, #tpu.memory_space<vmem>>, vector<8x7xbf16>,
    %103 = vector.extract_strided_slice %62 {offsets = [0, 8], sizes = [8, 56], strides = [1, 1]} : vector<8x64xf32> to vector<8x56xf32>
    %104 = arith.truncf %103 : vector<8x56xf32> to vector<8x56xbf16>
    %c56 = arith.constant 56 : index
    %c0_66 = arith.constant 0 : index
    %105 = vector.load %arg9[%c56, %c0_66] : memref<72x64xbf16, #tpu.memory_space<vmem>>, vector<8x56xbf16>
    tpu.vector_store %arg9[%c56, %c0_66], %104 {strides = array<i32>} : memref<72x64xbf16, #tpu.memory_space<vmem>>, vector<8x56xbf16>,
    %cst_67 = arith.constant 0.000000e+00 : bf16
    %106 = vector.broadcast %cst_67 : bf16 to vector<8x8xbf16>
    %c56_68 = arith.constant 56 : index
    %c56_69 = arith.constant 56 : index
    %107 = vector.load %arg9[%c56_68, %c56_69] : memref<72x64xbf16, #tpu.memory_space<vmem>>, vector<8x8xbf16>
    tpu.vector_store %arg9[%c56_68, %c56_69], %106 {strides = array<i32>} : memref<72x64xbf16, #tpu.memory_space<vmem>>, vector<8x8xbf16>,
    %108 = vector.extract_strided_slice %70 {offsets = [0, 9], sizes = [8, 55], strides = [1, 1]} : vector<8x64xf32> to vector<8x55xf32>
    %109 = arith.truncf %108 : vector<8x55xf32> to vector<8x55xbf16>
    %c64 = arith.constant 64 : index
    %c0_70 = arith.constant 0 : index
    %110 = vector.load %arg9[%c64, %c0_70] : memref<72x64xbf16, #tpu.memory_space<vmem>>, vector<8x55xbf16>
    tpu.vector_store %arg9[%c64, %c0_70], %109 {strides = array<i32>} : memref<72x64xbf16, #tpu.memory_space<vmem>>, vector<8x55xbf16>,
    %cst_71 = arith.constant 0.000000e+00 : bf16
    %111 = vector.broadcast %cst_71 : bf16 to vector<8x9xbf16>
    %c64_72 = arith.constant 64 : index
    %c55 = arith.constant 55 : index
    %112 = vector.load %arg9[%c64_72, %c55] : memref<72x64xbf16, #tpu.memory_space<vmem>>, vector<8x9xbf16>
    tpu.vector_store %arg9[%c64_72, %c55], %111 {strides = array<i32>} : memref<72x64xbf16, #tpu.memory_space<vmem>>, vector<8x9xbf16>,
    %c0_73 = arith.constant 0 : index
    %c0_74 = arith.constant 0 : index
    %113 = vector.load %arg5[%c0_73, %c0_74] : memref<8x72xbf16, #tpu.memory_space<vmem>>, vector<8x72xbf16>
    %c0_75 = arith.constant 0 : index
    %c0_76 = arith.constant 0 : index
    %114 = vector.load %arg9[%c0_75, %c0_76] : memref<72x64xbf16, #tpu.memory_space<vmem>>, vector<72x64xbf16>
    %cst_77 = arith.constant dense<0.000000e+00> : vector<8x64xf32>
    %115 = tpu.matmul %113, %114, %cst_77 {dimension_numbers = #tpu.dot_dimension_numbers<[1], [0], [0], [1], [0, 0, 1, 1], [], []>} : vector<8x72xbf16>, vector<72x64xbf16>, vector<8x64xf32> -> vector<8x64xf32>
    %c0_78 = arith.constant 0 : index
    %c0_79 = arith.constant 0 : index
    %116 = vector.load %arg6[%c0_78, %c0_79] : memref<8x1xf32, #tpu.memory_space<vmem>>, vector<8x1xf32>
    %117 = vector.broadcast %116 : vector<8x1xf32> to vector<8x64xf32>
    %118 = arith.addf %115, %117 : vector<8x64xf32>
    %cst_80 = arith.constant 0.000000e+00 : f32
    %119 = vector.broadcast %cst_80 : f32 to vector<8x64xf32>
    %120 = arith.cmpf oge, %118, %119 : vector<8x64xf32>
    %cst_81 = arith.constant 2.000000e-01 : f32
    %121 = vector.broadcast %cst_81 : f32 to vector<8x64xf32>
    %122 = arith.mulf %121, %118 : vector<8x64xf32>
    %123 = arith.select %120, %118, %122 : vector<8x64xi1>, vector<8x64xf32>
    %c0_82 = arith.constant 0 : index
    %c0_83 = arith.constant 0 : index
    %c0_84 = arith.constant 0 : index
    %124 = vector.load %arg7[%c0_82, %c0_83, %c0_84] : memref<1x8x64xf32, #tpu.memory_space<vmem>>, vector<1x8x64xf32>
    %125 = vector.shape_cast %124 : vector<1x8x64xf32> to vector<8x64xf32>
    %126 = vector.shape_cast %123 : vector<8x64xf32> to vector<1x8x64xf32>
    tpu.vector_store %arg7[%c0_82, %c0_83, %c0_84], %126 {strides = array<i32>} : memref<1x8x64xf32, #tpu.memory_space<vmem>>, vector<1x8x64xf32>,
    return
  }
  func.func @transform_0(%arg0: i32) -> (i32, i32) {
    %c0_i32 = arith.constant 0 : i32
    %c0_i32_0 = arith.constant 0 : i32
    %c0_i32_1 = arith.constant 0 : i32
    return %c0_i32, %c0_i32_0 : i32, i32
  }
  func.func @transform_1(%arg0: i32) -> (i32, i32, i32) {
    %c0_i32 = arith.constant 0 : i32
    %c0_i32_0 = arith.constant 0 : i32
    %c0_i32_1 = arith.constant 0 : i32
    return %arg0, %c0_i32, %c0_i32_0 : i32, i32, i32
  }
  func.func @transform_2(%arg0: i32) -> (i32, i32) {
    %c0_i32 = arith.constant 0 : i32
    %c0_i32_0 = arith.constant 0 : i32
    %c0_i32_1 = arith.constant 0 : i32
    return %c0_i32, %c0_i32_0 : i32, i32
  }
  func.func @transform_3(%arg0: i32) -> (i32, i32) {
    %c0_i32 = arith.constant 0 : i32
    %c0_i32_0 = arith.constant 0 : i32
    %c0_i32_1 = arith.constant 0 : i32
    return %c0_i32, %c0_i32_0 : i32, i32
  }
  func.func @transform_4(%arg0: i32) -> (i32, i32) {
    %c0_i32 = arith.constant 0 : i32
    %c0_i32_0 = arith.constant 0 : i32
    %c0_i32_1 = arith.constant 0 : i32
    return %c0_i32, %c0_i32_0 : i32, i32
  }
  func.func @transform_5(%arg0: i32) -> (i32, i32) {
    %c0_i32 = arith.constant 0 : i32
    %c0_i32_0 = arith.constant 0 : i32
    %c0_i32_1 = arith.constant 0 : i32
    return %c0_i32, %c0_i32_0 : i32, i32
  }
  func.func @transform_6(%arg0: i32) -> (i32, i32, i32) {
    %c0_i32 = arith.constant 0 : i32
    %c0_i32_0 = arith.constant 0 : i32
    %c0_i32_1 = arith.constant 0 : i32
    return %arg0, %c0_i32, %c0_i32_0 : i32, i32, i32
  }
}

</mosaic_0001>

<bundles_post_ra>
// kernel: downblock_forward.1
= control target key start
LH: loop header
LB: loop body
LE: loop exit
PB: predicated region body
PF: predicated region fallthrough
CT: control target
= control target key end

     0   :  { %s779_s21 = smov 0   ;;  %s874_s0 = inlined_call_operand.vmem [shape: s32[1,64], index: 0, kind: input, shape index: {}]   ;;  %s875_s1 = inlined_call_operand.vmem [shape: f32[2,16,64], index: 1, kind: input, shape index: {}]   ;;  %s876_s2 = inlined_call_operand.vmem [shape: bf16[8,36], index: 2, kind: input, shape index: {}]   ;;  %s877_s3 = inlined_call_operand.vmem [shape: f32[8,1], index: 3, kind: input, shape index: {}]   ;;  %s878_s4 = inlined_call_operand.vmem [shape: bf16[8,72], index: 4, kind: input, shape index: {}]   ;;  %s879_s5 = inlined_call_operand.vmem [shape: f32[8,1], index: 5, kind: input, shape index: {}]   ;;  %s880_s6 = inlined_call_operand.vmem [shape: f32[2,8,64], index: 6, kind: output, shape index: {}]  }
   0x1 LB: > { %s629_s22 = sadd.s32 4294967295, %s731_s21   ;;  %p633_p0 = scmp.ge.s32.totalorder %s731_s21, 1  ;;  %s731_s21 = sphi %s779_s21, %s16_s21  }
   0x2   : > { %p212_p1 = scmp.lt.s32.totalorder %s731_s21, 3 }
   0x4   : > { %p213_p2 = pnand %p633_p0, %p212_p1 }
   0x5   : > { %p241_p3 = scmp.lt.s32.totalorder (!%p213_p2), %s629_s22, 1  ;;  %v790_v0 = vld [vmem:[%s874_s0] sm:$0x1] (!%p213_p2)  ;;  %v257_v1 = vlaneseq (!%p213_p2)  ;;  %vm277_vm1 = vcmask (!%p213_p2), 60418   ;;  %v733_v3 = vmov (!%p213_p2), 0   ;;  %vm289_vm2 = vcmask (!%p213_p2), 58368  }
   0x6   : > { %216 = sbr.rel (%p213_p2) target bundleno = 743 (0x2e7), region = 44  ;;  %vm252_vm0 = vcmp.ne.s32.totalorder (!%p213_p2), %v790_v0, 7  ;;  %278 = vst.msk [vmem:[#allocation2] sm:$0xc] (!%p213_p2), %vm277_vm1, %v733_v3  ;;  %715 = vset.pattern.permute.xlu1 (!%p213_p2), %v733_v3  ;;  %716 = vset.pattern.permute.xlu0 (!%p213_p2), %v733_v3  ;;  %vm264_vm3 = vcmask (!%p213_p2), 66560   ;;  %vm297_vm4 = vcmask (!%p213_p2), 3074  }
   0x7   : > { %v795_v2 = vshrl.u32 (!%p213_p2), %v257_v1, 7  ;;  %v256_v4 = vsel (!%p213_p2), %vm252_vm0, 1, %v733_v3  ;;  %290 = vst.msk [vmem:[#allocation2 + $0x4] sm:$0x3] (!%p213_p2), %vm289_vm2, %v733_v3  ;;  %vm313_vm5 = vcmask (!%p213_p2), 1024   ;;  %vm311_vm6 = vcmask (!%p213_p2), 519170  }
   0x8   : > { %265 = vst.msk [vmem:[#allocation2] sm:$0x3] (!%p213_p2), %vm264_vm3, %v733_v3  ;;  %vm309_vm7 = vcmask (!%p213_p2), 517120   ;;  %v734_v11 = vmov (!%p213_p2), 0.0   ;;  %s735_s29 = smov (!%p213_p2), 8   ;;  %s736_s30 = smov (!%p213_p2), 9  }
   0x9   : > { %v259_v5 = vsub.s32 (!%p213_p2), 0, %v795_v2  ;;  %298 = vst.msk [vmem:[#allocation2 + $0x4] sm:$0xc] (!%p213_p2), %vm297_vm4, %v733_v3  ;;  %672 = vmatprep.subr.bf16.mxu0 (!%p213_p2), %v734_v11  ;;  %682 = vmatprep.subr.bf16.mxu1 (!%p213_p2), %v734_v11  ;;  %s737_s7 = smov (!%p213_p2), 1   ;;  %vm738_vm9 = vmmov (!%p213_p2), 0   ;;  %v330_v20 = vld [vmem:[%s877_s3] sm:$0xff] (!%p213_p2) }
   0xa   : > { %314 = vst.msk [vmem:[#allocation2 + $0xc] sm:$0x3] (!%p213_p2), %vm313_vm5, %v733_v3  ;;  %678 = vmatprep.mubr.msk.bf16.mxu0 (!%p213_p2), %vm738_vm9, %v734_v11  ;;  %692 = vmatprep.mubr.msk.bf16.mxu1 (!%p213_p2), %vm738_vm9, %v734_v11  ;;  %vm287_vm10 = vcmask (!%p213_p2), 519234   ;;  %vm295_vm11 = vcmask (!%p213_p2), 517184   ;;  %vm275_vm12 = vcmask (!%p213_p2), 517192   ;;  %vm306_vm13 = vcmask (!%p213_p2), 519178  }
   0xb   : > { %v812_v7 = vrot.slane (!%p213_p2), %v256_v4, %v259_v5  ;;  %vm318_vm14 = vcmask (!%p213_p2), 517128   ;;  %vm355_vm15 = vcmask (!%p213_p2), 1041408   ;;  %v324_v30 = vld [vmem:[%s876_s2] sm:$0xf] (!%p213_p2)  ;;  %vm351_vm0 = vcmask (!%p213_p2), 293888   ;;  %s739_s12 = smov (!%p213_p2), 7  }
   0xc   : > { %vm421_vm1 = vcmask (!%p213_p2), 60416   ;;  %vm410_vm2 = vcmask (!%p213_p2), 68608   ;;  %vm253_vm3 = vcmp.ne.s32.totalorder (!%p213_p2), %v790_v0, 0  ;;  %vm443_vm4 = vcmask (!%p213_p2), 3072   ;;  %s740_s13 = smov (!%p213_p2), 121   ;;  %s741_s14 = smov (!%p213_p2), 127  }
   0xd   : > { %s882_s22 = smov (!%p241_p3, %s629_s22), 1  ;;  %vm261_vm8 = vcmp.eq.s32.totalorder %v812_v7, 1  ;;  %422 = vst.msk [vmem:[#allocation3 + $0x4] sm:$0xf] %vm421_vm1, %v733_v3  ;;  %v403_v32 = vsel %vm253_vm3, 1, %v733_v3  ;;  %vm432_vm5 = vcmask 52224  }
   0xe   : > { %s655_s25 = sshll.u32 %s882_s22, 4  ;;  %411 = vst.msk [vmem:[#allocation3] sm:$0xf] %vm410_vm2, %v733_v3  ;;  %v407_v36 = vrot.slane %v403_v32, %v259_v5  ;;  %s742_s15 = smov 119   ;;  %v490_v46 = vld [vmem:[%s879_s5] sm:$0xff]  ;;  %vm476_vm1 = vcmask 445440  }
   0xf   : > { %s245_s28 = scalar_lea.vmem %s875_s1, %s655_s25  ;;  %444 = vst.msk [vmem:[#allocation3 + $0xc] sm:$0xf] %vm443_vm4, %v733_v3  ;;  %s743_s16 = smov 120   ;;  %vm478_vm2 = vcmask 519608   ;;  %vm469_vm3 = vcmask 453632   ;;  %vm471_vm4 = vcmask 519616  }
  0x10   : > { %v255_v6 = vld [vmem:[%s245_s28 + $0x8] sm:$0xff]  ;;  %v254_v8 = vld [vmem:[%s245_s28] sm:$0xff]  ;;  %433 = vst.msk [vmem:[#allocation3 + $0x8] sm:$0xf] %vm432_vm5, %v733_v3  ;;  %vm408_vm9 = vcmp.eq.s32.totalorder %v407_v36, 1  ;;  %vm527_vm5 = vcmask 1043456  }
  0x11   : > { %v657_v9 = vpack.c.bf16 %v255_v6, %v255_v6  ;;  %v308_v10 = vpack.c.bf16 %v254_v8, %v254_v8  ;;  %v263_v13 = vsel %vm261_vm8, %v255_v6, 0.0  ;;  %v262_v15 = vsel %vm261_vm8, %v254_v8, 0.0  ;;  %v480_v61 = vld [vmem:[%s878_s4] sm:$0xf]  ;;  %s636_s23 = sshll.u32 %s882_s22, 3 }
  0x12   : > { %v656_v14 = vpack.c.bf16 %v263_v13, %v263_v13  ;;  %v658_v18 = vpack.c.bf16 %v262_v15, %v262_v15  ;;  %s249_s26 = scalar_lea.vmem %s880_s6, %s636_s23 }
  0x13   : > { %v283_v12 = vrot.slane %v657_v9, 6  ;;  %310 = vst.msk [vmem:[#allocation2 + $0x8] sm:$0x3] %vm309_vm7, %v308_v10 }
  0x14   : > { %312 = vst.msk [vmem:[#allocation2 + $0x8] sm:$0xc] %vm311_vm6, %v308_v10  ;;  %v270_v17 = vrot.slane %v656_v14, 6 }
  0x15   : > { %284 = vrot.lane.b32.xlu0 %v283_v12, %s735_s29  ;;  %321 = vst.msk [vmem:[#allocation2 + $0xc] sm:$0xc] %vm311_vm6, %v283_v12  ;;  %v291_v16 = vrot.slane %v283_v12, 4 }
  0x16   : > { %v271_v19 = vrot.slane %v270_v17, 4 }
  0x17   : > { %292 = vrot.lane.b32.xlu1 %v291_v16, %s735_s29  ;;  %323 = vst.msk [vmem:[#allocation2 + $0x10] sm:$0x3] %vm309_vm7, %v291_v16  ;;  %vm450_vm7 = vcmask 519168  }
  0x19   : > { %272 = vrot.lane.b32.xlu0 %v271_v19, %s736_s30 }
  0x1b   : > { %303 = vrot.lane.b32.xlu1 %v658_v18, %s737_s7 }
  0x1d   : > { %315 = vrot.lane.b32.xlu0 %v271_v19, %s737_s7 }
  0x1e   : > { %v719_v28 = vld [vmem:[#allocation2 + $0x10] ss:$0 sps:$4 sm:$0x33]  }
  0x1f   : > { %333 = vperm.xlu1 %715, %v330_v20   ;;  %v357_v29 = vsel %vm355_vm15, %v719_v28, 0  ;;  %vm455_vm15 = vcmask 510976  }
  0x87   : > { %v285_v21 = vpop.permute.xlu0 %284 }
  0x88   : > { %288 = vst.msk [vmem:[#allocation2] sm:$0xc] %vm287_vm10, %v285_v21  ;;  %vm419_vm10 = vcmask 519240  }
  0x89   : > { %v293_v22 = vpop.permute.xlu1 %292 }
  0x8a   : > { %296 = vst.msk [vmem:[#allocation2 + $0x4] sm:$0x3] %vm295_vm11, %v293_v22  ;;  %vm448_vm11 = vcmask 519176  }
  0x8b   : > { %v273_v23 = vpop.permute.xlu0 %272 }
  0x8c   : > { %276 = vst.msk [vmem:[#allocation2] sm:$0x3] %vm275_vm12, %v273_v23  ;;  %vm441_vm12 = vcmask 519224  }
  0x8d   : > { %v304_v24 = vpop.permute.xlu1 %303 }
  0x8e   : > { %307 = vst.msk [vmem:[#allocation2 + $0x4] sm:$0xc] %vm306_vm13, %v304_v24  ;;  %vm462_vm13 = vcmask 461824  }
  0x8f   : > { %v316_v25 = vpop.permute.xlu0 %315 }
  0x90   : > { %319 = vst.msk [vmem:[#allocation2 + $0xc] sm:$0x3] %vm318_vm14, %v316_v25  ;;  %vm464_vm14 = vcmask 519624  }
  0x95   : > { %v717_v26 = vld [vmem:[#allocation2] sm:$0xff]  }
  0x96   : > { %673 = vmatpush3.bf16.msra.mxu0 %v717_v26 }
  0x97   : > { %674 = vmatprep.subr.bf16.mxu0 %v734_v11  ;;  %v718_v27 = vld [vmem:[#allocation2 + $0x8] sm:$0xff]  }
  0x9a   : > { %675 = vmatpush3.bf16.msra.mxu0 %v718_v27 }
  0x9b   : > { %676 = vmatprep.subr.bf16.mxu0 %v734_v11 }
  0x9e   : > { %677 = vmatpush3.bf16.msra.mxu0 %v357_v29  ;;  %v334_v31 = vpop.permute.xlu1 %333 }
  0xa1   : > { %679 = vmatmul.mubr.msk.bf16.vlgmr.msra.gmra.mrb[0].mxu0 %vm351_vm0, %v324_v30  ;;  %vm457_vm0 = vcmask 519672  }
 0x174   : > { %v393_v33 = vpop.f32.mrb[0].mxu0 }
 0x175   : > { %v394_v34 = vadd.f32 %v393_v33, %v334_v31  ;;  %v680_v35 = vpop.f32.mrb[1].mxu0 }
 0x176   : > { %v396_v37 = vpop.f32.mrb[2].mxu0 }
 0x177   : > { %vm399_vm6 = vcmp.ge.f32.partialorder %v394_v34, 0.0  ;;  %v400_v38 = vmul.f32 0.2, %v394_v34  ;;  %v681_v39 = vpop.f32.mrb[3].mxu0 }
 0x179   : > { %v401_v40 = vsel %vm399_vm6, %v394_v34, %v400_v38  ;;  %vm523_vm6 = vcmask 588800  }
 0x17a   : > { %v423_v41 = vpack.c.bf16 %v401_v40, %v401_v40  ;;  %v402_v42 = vsel %vm261_vm8, %v401_v40, 0.0  ;;  %v409_v44 = vsel %vm408_vm9, %v401_v40, 0.0  ;;  %vm430_vm8 = vcmask 519232  }
 0x17b   : > { %v659_v43 = vpack.c.bf16 %v402_v42, %v402_v42  ;;  %v661_v45 = vpack.c.bf16 %v409_v44, %v409_v44 }
 0x17c   : > { %427 = vrot.lane.b32.xlu1 %v423_v41, %s735_s29  ;;  %451 = vst.msk [vmem:[#allocation3 + $0x10] sm:$0xf] %vm450_vm7, %v423_v41  ;;  %vm574_vm7 = vcmask 523264  }
 0x17d   : > { %416 = vrot.lane.b32.xlu0 %v659_v43, %s736_s30 }
 0x180   : > { %445 = vrot.lane.b32.xlu1 %v659_v43, %s737_s7 }
 0x181   : > { %438 = vrot.lane.b32.xlu0 %v661_v45, %s739_s12 }
 0x184   : > { %459 = vrot.lane.b32.xlu1 %v659_v43, %s740_s13 }
 0x185   : > { %452 = vrot.lane.b32.xlu0 %v661_v45, %s741_s14 }
 0x188   : > { %473 = vrot.lane.b32.xlu1 %v661_v45, %s742_s15 }
 0x189   : > { %466 = vrot.lane.b32.xlu0 %v423_v41, %s743_s16 }
 0x18d   : > { %493 = vperm.xlu0 %716, %v490_v46  }
 0x1ee   : > { %v428_v47 = vpop.permute.xlu1 %427 }
 0x1ef   : > { %431 = vst.msk [vmem:[#allocation3 + $0x4] sm:$0xf] %vm430_vm8, %v428_v47  ;;  %v417_v48 = vpop.permute.xlu0 %416 }
 0x1f0   : > { %420 = vst.msk [vmem:[#allocation3] sm:$0xf] %vm419_vm10, %v417_v48 }
 0x1f2   : > { %v446_v49 = vpop.permute.xlu1 %445 }
 0x1f3   : > { %449 = vst.msk [vmem:[#allocation3 + $0xc] sm:$0xf] %vm448_vm11, %v446_v49  ;;  %v439_v50 = vpop.permute.xlu0 %438 }
 0x1f4   : > { %442 = vst.msk [vmem:[#allocation3 + $0x8] sm:$0xf] %vm441_vm12, %v439_v50 }
 0x1f6   : > { %v460_v51 = vpop.permute.xlu1 %459 }
 0x1f7   : > { %463 = vst.msk [vmem:[#allocation3 + $0x18] sm:$0xf] %vm462_vm13, %v460_v51  ;;  %v453_v52 = vpop.permute.xlu0 %452  ;;  %v720_v53 = vld [vmem:[#allocation3] sm:$0xff]  }
 0x1f8   : > { %465 = vst.msk [vmem:[#allocation3 + $0x18] sm:$0xf] %vm464_vm14, %v733_v3  ;;  %683 = vmatpush3.bf16.msra.mxu1 %v720_v53 }
 0x1f9   : > { %456 = vst.msk [vmem:[#allocation3 + $0x14] sm:$0xf] %vm455_vm15, %v453_v52  ;;  %684 = vmatprep.subr.bf16.mxu1 %v734_v11 }
 0x1fa   : > { %458 = vst.msk [vmem:[#allocation3 + $0x14] sm:$0xf] %vm457_vm0, %v733_v3  ;;  %v474_v54 = vpop.permute.xlu1 %473 }
 0x1fb   : > { %477 = vst.msk [vmem:[#allocation3 + $0x20] sm:$0xf] %vm476_vm1, %v474_v54  ;;  %v467_v55 = vpop.permute.xlu0 %466  ;;  %v721_v56 = vld [vmem:[#allocation3 + $0x8] sm:$0xff]  }
 0x1fc   : > { %479 = vst.msk [vmem:[#allocation3 + $0x20] sm:$0xf] %vm478_vm2, %v733_v3  ;;  %685 = vmatpush3.bf16.msra.mxu1 %v721_v56 }
 0x1fd   : > { %470 = vst.msk [vmem:[#allocation3 + $0x1c] sm:$0xf] %vm469_vm3, %v467_v55  ;;  %686 = vmatprep.subr.bf16.mxu1 %v734_v11 }
 0x1fe   : > { %472 = vst.msk [vmem:[#allocation3 + $0x1c] sm:$0xf] %vm471_vm4, %v733_v3 }
 0x201   : > { %v722_v57 = vld [vmem:[#allocation3 + $0x10] sm:$0xff]  }
 0x202   : > { %687 = vmatpush3.bf16.msra.mxu1 %v722_v57 }
 0x203   : > { %688 = vmatprep.subr.bf16.mxu1 %v734_v11  ;;  %v724_v58 = vld [vmem:[#allocation3 + $0x20] ss:$0 sps:$4 sm:$0xff]  }
 0x204   : > { %v529_v60 = vsel %vm527_vm5, %v724_v58, 0 }
 0x205   : > { %v723_v59 = vld [vmem:[#allocation3 + $0x18] sm:$0xff]  }
 0x206   : > { %689 = vmatpush3.bf16.msra.mxu1 %v723_v59 }
 0x207   : > { %690 = vmatprep.subr.bf16.mxu1 %v734_v11 }
 0x20a   : > { %691 = vmatpush3.bf16.msra.mxu1 %v529_v60 }
 0x20c   : > { %v494_v62 = vpop.permute.xlu0 %493 }
 0x20d   : > { %693 = vmatmul.mubr.msk.bf16.vlgmr.msra.gmra.mrb[0].mxu1 %vm523_vm6, %v480_v61 }
 0x2e0   : > { %v565_v63 = vpop.f32.mrb[0].mxu1 }
 0x2e1   : > { %v566_v0 = vadd.f32 %v565_v63, %v494_v62  ;;  %v694_v1 = vpop.f32.mrb[1].mxu1 }
 0x2e2   : > { %v568_v2 = vpop.f32.mrb[2].mxu1 }
 0x2e3   : > { %vm571_vm9 = vcmp.ge.f32.partialorder %v566_v0, 0.0  ;;  %v572_v3 = vmul.f32 0.2, %v566_v0  ;;  %v695_v4 = vpop.f32.mrb[3].mxu1 }
 0x2e5   : > { %v573_v5 = vsel %vm571_vm9, %v566_v0, %v572_v3 }
 0x2e6   : > { %575 = vst.msk [vmem:[%s249_s26] sm:$0xff] %vm574_vm7, %v573_v5 }
 0x2e7 PF: > { %s16_s21 = sadd.s32 1, %s731_s21  }
 0x2e8   : > { %p13_p4 = scmp.ge.s32.totalorder %s16_s21, 4  }
 0x2ea   :  { %15 = sbr.rel (!%p13_p4) target bundleno = 1 (0x1), region = 74 }

</bundles_post_ra>
